<compile_context>
chip_gen: v5e
topology: v5e:2x2
jax: 0.10.0
libtpu: 0.0.40
codegen_flags: <defaults>
</compile_context>

<pallas_src>
import jax
import jax.numpy as jnp
from jax.experimental import pallas as pl
from jax.experimental.pallas import tpu as pltpu


def _round_up(n, m):
    return ((n + m - 1) // m) * m


def discriminator_kernel(x_ref,
                         w1_ref, b1_ref,
                         w2_ref, b2_ref,
                         w3_ref, b3_ref,
                         w4_ref, b4_ref,
                         o_ref):
    """One (TB, isize) batch tile of the fused 4-layer MLP.

    Output block is (1, 1, TB): batch along lanes -> dense stores instead of
    TB/8 masked single-lane stores.
    """
    # bf16 x stream (HBM bandwidth); upcast once, all math in f32 after that.
    x = x_ref[...].astype(jnp.float32)                          # (TB, isize)

    # Linear 1 + ReLU  (MXU, f32 accumulate)
    h = jnp.dot(x, w1_ref[...], preferred_element_type=jnp.float32) + b1_ref[...]
    h = jnp.maximum(h, 0.0)

    # Linear 2 + ReLU
    h = jnp.dot(h, w2_ref[...], preferred_element_type=jnp.float32) + b2_ref[...]
    h = jnp.maximum(h, 0.0)

    # Linear 3 + Tanh (EUP)
    h = jnp.dot(h, w3_ref[...], preferred_element_type=jnp.float32) + b3_ref[...]
    h = jnp.tanh(h)                                             # (TB, isize//4)

    # Linear 4 + Sigmoid on the VPU/XLU instead of a 1-wide MXU matmul:
    # transpose -> batch on lanes, broadcast-mul by the w4 column, reduce over
    # the few feature sublanes, add the scalar bias held in SMEM.
    ht = h.T                                                    # (isize//4, TB)
    logits = jnp.sum(ht * w4_ref[...], axis=0, keepdims=True) + b4_ref[0, 0]
    o_ref[...] = jax.nn.sigmoid(logits)[None].astype(o_ref.dtype)   # (1, 1, TB)


def discriminator_forward(x, params, *, block_b=None):
    """x: (B, isize) float. Returns (B, 1) float32."""
    B, isize = x.shape
    assert isize % 4 == 0, "input size has to be a multiple of 4"

    # Batch tile: large enough to amortize the ~600-cycle per-grid-step
    # pipeline overhead, tiny for VMEM even when double-buffered, and capped
    # at ceil(B/2) so the grid keeps >= 2 steps (v7x megacore shards the
    # "parallel" batch axis over its 2 TensorCores).
    if block_b is None:
        block_b = min(8192, max(16, _round_up((B + 1) // 2, 16)))
    tb = _round_up(block_b, 16)              # bf16 packs (16, 128) per vreg
    b_pad = _round_up(B, tb)
    num_tiles = b_pad // tb

    x_p = x.astype(jnp.bfloat16)             # halve the dominant HBM read
    if b_pad != B:
        x_p = jnp.pad(x_p, ((0, b_pad - B), (0, 0)))

    w1, b1 = params["w1"], params["b1"]
    w2, b2 = params["w2"], params["b2"]
    w3, b3 = params["w3"], params["b3"]
    w4, b4 = params["w4"], params["b4"]

    # x / out move with the grid; weights & biases use constant index maps so
    # they are DMA'd once and stay resident in VMEM across all grid steps.
    # (They are a few KiB at isize=32, so default buffering is fine; for very
    # large isize, single-buffering them via pipeline_mode would save VMEM on
    # v7x's 64 MiB.)
    in_specs = [
        pl.BlockSpec((tb, isize), lambda i: (i, 0)),            # x tile
        pl.BlockSpec(w1.shape, lambda i: (0, 0)),
        pl.BlockSpec(b1.shape, lambda i: (0, 0)),
        pl.BlockSpec(w2.shape, lambda i: (0, 0)),
        pl.BlockSpec(b2.shape, lambda i: (0, 0)),
        pl.BlockSpec(w3.shape, lambda i: (0, 0)),
        pl.BlockSpec(b3.shape, lambda i: (0, 0)),
        pl.BlockSpec(w4.shape, lambda i: (0, 0)),               # (isize//4, 1)
        pl.BlockSpec(memory_space=pltpu.MemorySpace.SMEM),      # b4 scalar (1,1)
    ]
    # Lane-dense output: one (1, 1, tb) row per grid step.
    out_specs = pl.BlockSpec((1, 1, tb), lambda i: (i, 0, 0))
    out_shape = jax.ShapeDtypeStruct((num_tiles, 1, tb), jnp.float32)

    param_bytes = sum(int(v.size) * v.dtype.itemsize for v in params.values())
    flops = 2 * b_pad * (isize * isize
                         + isize * (isize // 2)
                         + (isize // 2) * (isize // 4)
                         + (isize // 4) * 1)
    transcendentals = b_pad * (isize // 4 + 1)
    bytes_accessed = b_pad * isize * 2 + b_pad * 4 + param_bytes

    # VMEM budget: double-buffered x + out tiles, resident params, headroom
    # for the fused f32 intermediates; comfortably under every generation's
    # physical VMEM (v7x: 64 MiB).
    vmem_bytes = (2 * tb * isize * 2 + 2 * tb * 4 + 2 * param_bytes
                  + 6 * tb * isize * 4)
    vmem_limit = int(min(max(vmem_bytes, 16 * 1024 * 1024), 48 * 1024 * 1024))

    out = pl.pallas_call(
        discriminator_kernel,
        out_shape=out_shape,
        grid=(num_tiles,),
        in_specs=in_specs,
        out_specs=out_specs,
        compiler_params=pltpu.CompilerParams(
            dimension_semantics=("parallel",),    # megacore sharding on v7x
            vmem_limit_bytes=vmem_limit,
        ),
        cost_estimate=pl.CostEstimate(
            flops=flops,
            transcendentals=transcendentals,
            bytes_accessed=bytes_accessed),
    )(x_p, w1, b1, w2, b2, w3, b3, w4, b4)

    return out.reshape(b_pad, 1)[:B]


def init_params(key, isize):
    """PyTorch-Linear-style init. Weights stored transposed (in, out), f32;
    biases stored as (1, out) f32 rows (b4 is the (1, 1) scalar)."""
    dims = [(isize, isize), (isize, isize // 2),
            (isize // 2, isize // 4), (isize // 4, 1)]
    params = {}
    for i, (fan_in, fan_out) in enumerate(dims, start=1):
        key, kw, kb = jax.random.split(key, 3)
        bound = 1.0 / jnp.sqrt(fan_in)
        params[f"w{i}"] = jax.random.uniform(
            kw, (fan_in, fan_out), jnp.float32, minval=-bound, maxval=bound)
        params[f"b{i}"] = jax.random.uniform(
            kb, (1, fan_out), jnp.float32, minval=-bound, maxval=bound)
    return params


def reference_forward(x, p):
    """Plain-JAX reference with the same bf16-input / f32-everything math."""
    xb = x.astype(jnp.bfloat16).astype(jnp.float32)
    h = jnp.maximum(xb @ p["w1"] + p["b1"], 0.0)
    h = jnp.maximum(h @ p["w2"] + p["b2"], 0.0)
    h = jnp.tanh(h @ p["w3"] + p["b3"])
    return jax.nn.sigmoid(h @ p["w4"] + p["b4"])


if __name__ == "__main__":
    isize = 32   # opt.isize, must be a multiple of 4

    key = jax.random.PRNGKey(0)
    key, k1, k2 = jax.random.split(key, 3)
    params = init_params(key, isize)

    # Case 1: tiny batch not a multiple of the tile -> pad/slice path, grid=1.
    x_small = jax.random.normal(k1, (6, isize), jnp.float32)
    out_small = jax.block_until_ready(discriminator_forward(x_small, params))
    ref_small = reference_forward(x_small, params)
    assert out_small.shape == (6, 1)
    assert bool(jnp.all(jnp.isfinite(out_small)))
    assert jnp.allclose(out_small, ref_small, atol=5e-3, rtol=5e-3)

    # Case 2: larger batch -> multi-step "parallel" grid with a padded tail.
    x_big = jax.random.normal(k2, (600, isize), jnp.float32)
    out_big = jax.block_until_ready(discriminator_forward(x_big, params))
    ref_big = reference_forward(x_big, params)
    assert out_big.shape == (600, 1)
    assert bool(jnp.all(jnp.isfinite(out_big)))
    assert jnp.allclose(out_big, ref_big, atol=5e-3, rtol=5e-3)

    print("KERNEL_OK")
</pallas_src>

<mosaic_0001>
module attributes {stable_mosaic.version = 11 : i64} {
  func.func @discriminator_kernel(%arg0: i32, %arg1: memref<16x32xbf16, #tpu.memory_space<vmem>>, %arg2: memref<32x32xf32, #tpu.memory_space<vmem>>, %arg3: memref<1x32xf32, #tpu.memory_space<vmem>>, %arg4: memref<32x16xf32, #tpu.memory_space<vmem>>, %arg5: memref<1x16xf32, #tpu.memory_space<vmem>>, %arg6: memref<16x8xf32, #tpu.memory_space<vmem>>, %arg7: memref<1x8xf32, #tpu.memory_space<vmem>>, %arg8: memref<8x1xf32, #tpu.memory_space<vmem>>, %arg9: memref<1x1xf32, #tpu.memory_space<smem>>, %arg10: memref<1x1x16xf32, #tpu.memory_space<vmem>>) attributes {dimension_semantics = [#tpu.dimension_semantics<parallel>], iteration_bounds = array<i64: 1>, scalar_prefetch = 0 : i64, scratch_operands = 0 : i64, tpu.core_type = #tpu.core_type<tc>, window_params = [{transform_indices = @transform_0, window_bounds = array<i64: 16, 32>}, {pipeline_mode = #tpu.pipeline_mode<synchronous>, transform_indices = @transform_1, window_bounds = array<i64: 32, 32>}, {pipeline_mode = #tpu.pipeline_mode<synchronous>, transform_indices = @transform_2, window_bounds = array<i64: 1, 32>}, {pipeline_mode = #tpu.pipeline_mode<synchronous>, transform_indices = @transform_3, window_bounds = array<i64: 32, 16>}, {pipeline_mode = #tpu.pipeline_mode<synchronous>, transform_indices = @transform_4, window_bounds = array<i64: 1, 16>}, {pipeline_mode = #tpu.pipeline_mode<synchronous>, transform_indices = @transform_5, window_bounds = array<i64: 16, 8>}, {pipeline_mode = #tpu.pipeline_mode<synchronous>, transform_indices = @transform_6, window_bounds = array<i64: 1, 8>}, {pipeline_mode = #tpu.pipeline_mode<synchronous>, transform_indices = @transform_7, window_bounds = array<i64: 8, 1>}, {transform_indices = @transform_8, window_bounds = array<i64: 1, 1>}, {transform_indices = @transform_9, window_bounds = array<i64: 1, 1, 16>}]} {
    %c0 = arith.constant 0 : index
    %c0_0 = arith.constant 0 : index
    %0 = vector.load %arg1[%c0, %c0_0] : memref<16x32xbf16, #tpu.memory_space<vmem>>, vector<16x32xbf16>
    %1 = arith.extf %0 : vector<16x32xbf16> to vector<16x32xf32>
    %c0_1 = arith.constant 0 : index
    %c0_2 = arith.constant 0 : index
    %2 = vector.load %arg2[%c0_1, %c0_2] : memref<32x32xf32, #tpu.memory_space<vmem>>, vector<32x32xf32>
    %cst = arith.constant dense<0.000000e+00> : vector<16x32xf32>
    %3 = tpu.matmul %1, %2, %cst {dimension_numbers = #tpu.dot_dimension_numbers<[1], [0], [0], [1], [0, 0, 1, 1], [], []>} : vector<16x32xf32>, vector<32x32xf32>, vector<16x32xf32> -> vector<16x32xf32>
    %c0_3 = arith.constant 0 : index
    %c0_4 = arith.constant 0 : index
    %4 = vector.load %arg3[%c0_3, %c0_4] : memref<1x32xf32, #tpu.memory_space<vmem>>, vector<1x32xf32>
    %5 = vector.broadcast %4 : vector<1x32xf32> to vector<16x32xf32>
    %6 = arith.addf %3, %5 : vector<16x32xf32>
    %cst_5 = arith.constant 0.000000e+00 : f32
    %7 = vector.broadcast %cst_5 : f32 to vector<16x32xf32>
    %8 = arith.maximumf %6, %7 : vector<16x32xf32>
    %c0_6 = arith.constant 0 : index
    %c0_7 = arith.constant 0 : index
    %9 = vector.load %arg4[%c0_6, %c0_7] : memref<32x16xf32, #tpu.memory_space<vmem>>, vector<32x16xf32>
    %cst_8 = arith.constant dense<0.000000e+00> : vector<16x16xf32>
    %10 = tpu.matmul %8, %9, %cst_8 {dimension_numbers = #tpu.dot_dimension_numbers<[1], [0], [0], [1], [0, 0, 1, 1], [], []>} : vector<16x32xf32>, vector<32x16xf32>, vector<16x16xf32> -> vector<16x16xf32>
    %c0_9 = arith.constant 0 : index
    %c0_10 = arith.constant 0 : index
    %11 = vector.load %arg5[%c0_9, %c0_10] : memref<1x16xf32, #tpu.memory_space<vmem>>, vector<1x16xf32>
    %12 = vector.broadcast %11 : vector<1x16xf32> to vector<16x16xf32>
    %13 = arith.addf %10, %12 : vector<16x16xf32>
    %cst_11 = arith.constant 0.000000e+00 : f32
    %14 = vector.broadcast %cst_11 : f32 to vector<16x16xf32>
    %15 = arith.maximumf %13, %14 : vector<16x16xf32>
    %c0_12 = arith.constant 0 : index
    %c0_13 = arith.constant 0 : index
    %16 = vector.load %arg6[%c0_12, %c0_13] : memref<16x8xf32, #tpu.memory_space<vmem>>, vector<16x8xf32>
    %cst_14 = arith.constant dense<0.000000e+00> : vector<16x8xf32>
    %17 = tpu.matmul %15, %16, %cst_14 {dimension_numbers = #tpu.dot_dimension_numbers<[1], [0], [0], [1], [0, 0, 1, 1], [], []>} : vector<16x16xf32>, vector<16x8xf32>, vector<16x8xf32> -> vector<16x8xf32>
    %c0_15 = arith.constant 0 : index
    %c0_16 = arith.constant 0 : index
    %18 = vector.load %arg7[%c0_15, %c0_16] : memref<1x8xf32, #tpu.memory_space<vmem>>, vector<1x8xf32>
    %19 = vector.broadcast %18 : vector<1x8xf32> to vector<16x8xf32>
    %20 = arith.addf %17, %19 : vector<16x8xf32>
    %21 = math.tanh %20 : vector<16x8xf32>
    %22 = tpu.transpose %21, [1, 0] : vector<16x8xf32> -> vector<8x16xf32>
    %c0_17 = arith.constant 0 : index
    %c0_18 = arith.constant 0 : index
    %23 = vector.load %arg8[%c0_17, %c0_18] : memref<8x1xf32, #tpu.memory_space<vmem>>, vector<8x1xf32>
    %24 = vector.broadcast %23 : vector<8x1xf32> to vector<8x16xf32>
    %25 = arith.mulf %22, %24 : vector<8x16xf32>
    %cst_19 = arith.constant dense<0.000000e+00> : vector<16xf32>
    %26 = vector.multi_reduction <add>, %25, %cst_19 [0] : vector<8x16xf32> to vector<16xf32>
    %27 = vector.shape_cast %26 : vector<16xf32> to vector<1x16xf32>
    %c0_20 = arith.constant 0 : index
    %c0_21 = arith.constant 0 : index
    %28 = memref.load %arg9[%c0_20, %c0_21] : memref<1x1xf32, #tpu.memory_space<smem>>
    %29 = vector.broadcast %28 : f32 to vector<1x16xf32>
    %30 = arith.addf %27, %29 : vector<1x16xf32>
    %31 = arith.negf %30 : vector<1x16xf32>
    %32 = math.exp %31 : vector<1x16xf32>
    %cst_22 = arith.constant 1.000000e+00 : f32
    %33 = vector.broadcast %cst_22 : f32 to vector<1x16xf32>
    %34 = arith.addf %33, %32 : vector<1x16xf32>
    %35 = arith.divf %33, %34 : vector<1x16xf32>
    %36 = vector.shape_cast %35 : vector<1x16xf32> to vector<1x1x16xf32>
    %c0_23 = arith.constant 0 : index
    %c0_24 = arith.constant 0 : index
    %c0_25 = arith.constant 0 : index
    %37 = vector.load %arg10[%c0_23, %c0_24, %c0_25] : memref<1x1x16xf32, #tpu.memory_space<vmem>>, vector<1x1x16xf32>
    tpu.vector_store %arg10[%c0_23, %c0_24, %c0_25], %36 {strides = array<i32>} : memref<1x1x16xf32, #tpu.memory_space<vmem>>, vector<1x1x16xf32>,
    return
  }
  func.func @transform_0(%arg0: i32) -> (i32, i32) {
    %c0_i32 = arith.constant 0 : i32
    %c0_i32_0 = arith.constant 0 : i32
    return %arg0, %c0_i32 : i32, i32
  }
  func.func @transform_1(%arg0: i32) -> (i32, i32) {
    %c0_i32 = arith.constant 0 : i32
    %c0_i32_0 = arith.constant 0 : i32
    %c0_i32_1 = arith.constant 0 : i32
    return %c0_i32, %c0_i32_0 : i32, i32
  }
  func.func @transform_2(%arg0: i32) -> (i32, i32) {
    %c0_i32 = arith.constant 0 : i32
    %c0_i32_0 = arith.constant 0 : i32
    %c0_i32_1 = arith.constant 0 : i32
    return %c0_i32, %c0_i32_0 : i32, i32
  }
  func.func @transform_3(%arg0: i32) -> (i32, i32) {
    %c0_i32 = arith.constant 0 : i32
    %c0_i32_0 = arith.constant 0 : i32
    %c0_i32_1 = arith.constant 0 : i32
    return %c0_i32, %c0_i32_0 : i32, i32
  }
  func.func @transform_4(%arg0: i32) -> (i32, i32) {
    %c0_i32 = arith.constant 0 : i32
    %c0_i32_0 = arith.constant 0 : i32
    %c0_i32_1 = arith.constant 0 : i32
    return %c0_i32, %c0_i32_0 : i32, i32
  }
  func.func @transform_5(%arg0: i32) -> (i32, i32) {
    %c0_i32 = arith.constant 0 : i32
    %c0_i32_0 = arith.constant 0 : i32
    %c0_i32_1 = arith.constant 0 : i32
    return %c0_i32, %c0_i32_0 : i32, i32
  }
  func.func @transform_6(%arg0: i32) -> (i32, i32) {
    %c0_i32 = arith.constant 0 : i32
    %c0_i32_0 = arith.constant 0 : i32
    %c0_i32_1 = arith.constant 0 : i32
    return %c0_i32, %c0_i32_0 : i32, i32
  }
  func.func @transform_7(%arg0: i32) -> (i32, i32) {
    %c0_i32 = arith.constant 0 : i32
    %c0_i32_0 = arith.constant 0 : i32
    %c0_i32_1 = arith.constant 0 : i32
    return %c0_i32, %c0_i32_0 : i32, i32
  }
  func.func @transform_8(%arg0: i32) -> (i32, i32) {
    %c0_i32 = arith.constant 0 : i32
    %c0_i32_0 = arith.constant 0 : i32
    %c0_i32_1 = arith.constant 0 : i32
    return %c0_i32, %c0_i32_0 : i32, i32
  }
  func.func @transform_9(%arg0: i32) -> (i32, i32, i32) {
    %c0_i32 = arith.constant 0 : i32
    %c0_i32_0 = arith.constant 0 : i32
    %c0_i32_1 = arith.constant 0 : i32
    return %arg0, %c0_i32, %c0_i32_0 : i32, i32, i32
  }
}

</mosaic_0001>

<bundles_post_ra>
// kernel: tpu_custom_call.1
= control target key start
LH: loop header
LB: loop body
LE: loop exit
PB: predicated region body
PF: predicated region fallthrough
CT: control target
= control target key end

     0   :  { %s407_s0 = inlined_call_operand.vmem [shape: bf16[16,32], index: 0, kind: input, shape index: {}]   ;;  %s408_s1 = inlined_call_operand.vmem [shape: f32[32,32], index: 1, kind: input, shape index: {}]   ;;  %s409_s2 = inlined_call_operand.vmem [shape: f32[1,32], index: 2, kind: input, shape index: {}]   ;;  %s410_s3 = inlined_call_operand.vmem [shape: f32[32,16], index: 3, kind: input, shape index: {}]   ;;  %s411_s4 = inlined_call_operand.vmem [shape: f32[1,16], index: 4, kind: input, shape index: {}]   ;;  %s412_s5 = inlined_call_operand.vmem [shape: f32[16,8], index: 5, kind: input, shape index: {}]   ;;  %s413_s6 = inlined_call_operand.vmem [shape: f32[1,8], index: 6, kind: input, shape index: {}]   ;;  %s414_s7 = inlined_call_operand.vmem [shape: f32[8,1], index: 7, kind: input, shape index: {}]   ;;  %s415_s8 = inlined_call_operand.<no memory space> [shape: f32[1,1], index: 8, kind: input, shape index: {}]   ;;  %s416_s9 = inlined_call_operand.hbm [shape: f32[1,1,16], index: 9, kind: output, shape index: {}]  }
   0x1   :  { %v41_v0 = vld [vmem:[%s408_s1 + $0x18] sm:$0xff]  ;;  %v40_v1 = vld [vmem:[%s408_s1 + $0x10] sm:$0xff]  ;;  %v249_v2 = vld [vmem:[%s407_s0] sm:$0xff]  }
   0x2   :  { %65 = vmatpush.msra.mxu0 %v41_v0  ;;  %252 = vmatpush.msra.mxu3 %v41_v0  ;;  %v81_v3 = vld [vmem:[%s410_s3 + $0x18] sm:$0xff]  ;;  %v39_v4 = vld [vmem:[%s408_s1 + $0x8] sm:$0xff] }
   0x3   :  { %104 = vmatpush.msra.mxu1 %v81_v3 }
   0x4   :  { %66 = vmatpush.msra.mxu0 %v40_v1  ;;  %253 = vmatpush.msra.mxu3 %v40_v1 }
   0x5   :  { %15 = vsyncpa [#allocation4], 0  ;;  %v38_v5 = vld [vmem:[%s408_s1] sm:$0xff]  ;;  %v250_v6 = vunpack.c.l.bf16 %v249_v2  ;;  %v251_v7 = vunpack.c.h.bf16 %v249_v2  ;;  %vm46_vm0 = vcmask 261120   ;;  %v80_v8 = vld [vmem:[%s410_s3 + $0x10] sm:$0xff]  ;;  %v297_v21 = vmov 0  }
   0x6   :  { %67 = vmatpush.msra.mxu0 %v39_v4  ;;  %254 = vmatpush.msra.mxu3 %v39_v4  ;;  %v79_v9 = vld [vmem:[%s410_s3 + $0x8] sm:$0xff]  ;;  %v78_v10 = vld [vmem:[%s410_s3] sm:$0xff]  ;;  %vm123_vm1 = vcmask 130048   ;;  %v202_v45 = vstv %s415_s8  ;;  %s298_s12 = smov [#allocation3]   ;;  %s232_s8 = sshll.u32 %s416_s9, 4  ;;  %vm223_vm5 = vcmask 122880   ;;  %s233_s8 = int_to_ptr.hbm [resolvable:$true] %s232_s8 }
   0x7   :  { %105 = vmatpush.msra.mxu1 %v80_v8  ;;  %v260_v11 = vld [vmem:[%s409_s2] ss:$0 sm:$0xff]  ;;  %v118_v18 = vld [vmem:[%s412_s5 + $0x8] sm:$0xff]  ;;  %259 = vset.pattern.permute.xlu0 %v297_v21  ;;  %s230_s13 = sshll.u32 %s298_s12, 4  ;;  %s231_s13 = int_to_ptr.vmem [resolvable:$true] %s230_s13 }
   0x8   :  { %68 = vmatpush.msra.mxu0 %v38_v5  ;;  %255 = vmatpush.msra.mxu3 %v38_v5  ;;  %v117_v19 = vld [vmem:[%s412_s5] sm:$0xff] }
   0x9   :  { %241 = vmatmul.msk.f32.vlgmr.msra.gmra.mxu0 %vm46_vm0, %v250_v6  ;;  %242 = vmatmul.msk.f32.vlgmr.msra.gmra.mxu3 %vm46_vm0, %v251_v7  ;;  %v187_v20 = vld [vmem:[%s414_s7] sm:$0xff] }
   0xa   :  { %106 = vmatpush.msra.mxu1 %v79_v9  ;;  %144 = vmatpush.msra.mxu2 %v118_v18  ;;  %v261_v22 = vld [vmem:[%s411_s4] ss:$0 sm:$0xff] }
   0xb   :  { %190 = vperm.xlu0 %259, %v187_v20   ;;  %v262_v29 = vld [vmem:[%s413_s6] ss:$0 sm:$0xff] }
   0xc   :  { %107 = vmatpush.msra.mxu1 %v78_v10  ;;  %145 = vmatpush.msra.mxu2 %v117_v19 }
  0x7d   :  { %v191_v36 = vpop.permute.xlu0 %190 }
  0x86   :  { %v70_v12 = vpop.f32.mrf.mxu0 }
  0x87   :  { %v71_v13 = vadd.f32 %v260_v11, %v70_v12 }
  0x89   :  { %v76_v14 = vmax.f32 %v71_v13, 0.0 }
  0x8b   :  { %243 = vmatmul.msk.f32.vlgmr.msra.gmra.mxu1 %vm46_vm0, %v76_v14 }
  0x8c   :  { %v73_v15 = vpop.f32.mrf.mxu3 }
  0x8d   :  { %v74_v16 = vadd.f32 %v260_v11, %v73_v15 }
  0x8f   :  { %v77_v17 = vmax.f32 %v74_v16, 0.0 }
  0x93   :  { %244 = vmatmul.msk.f32.gmra.mxu1 %vm46_vm0, %v77_v17 }
 0x108   :  { %v109_v23 = vpop.f32.mrf.mxu1 }
 0x109   :  { %v110_v24 = vadd.f32 %v261_v22, %v109_v23 }
 0x10b   :  { %v115_v25 = vmax.f32 %v110_v24, 0.0 }
 0x10d   :  { %245 = vmatmul.msk.f32.vlgmr.msra.gmra.mxu2 %vm123_vm1, %v115_v25 }
 0x110   :  { %v112_v26 = vpop.f32.mrf.mxu1 }
 0x111   :  { %v113_v27 = vadd.f32 %v261_v22, %v112_v26 }
 0x113   :  { %v116_v28 = vmax.f32 %v113_v27, 0.0 }
 0x115   :  { %246 = vmatmul.msk.f32.gmra.mxu2 %vm123_vm1, %v116_v28 }
 0x190   :  { %v147_v30 = vpop.f32.mrf.mxu2 }
 0x191   :  { %v148_v31 = vadd.f32 %v262_v29, %v147_v30 }
 0x193   :  { %263 = vtanh.f32 %v148_v31 }
 0x198   :  { %v150_v32 = vpop.f32.mrf.mxu2 }
 0x199   :  { %v264_v33 = vpop.eup %263  ;;  %v151_v34 = vadd.f32 %v262_v29, %v150_v32 }
 0x19a   :  { %155 = vxpose.xlu0.b32.start [1/2] (short) (narrow) %v264_v33, 8 }
 0x19b   :  { %265 = vtanh.f32 %v151_v34 }
 0x1a1   :  { %v266_v35 = vpop.eup %265 }
 0x1a2   :  { %156 = vxpose.xlu0.b32.end [2/2] (short) (narrow) %v266_v35, 8 }
 0x23e   :  { %v171_v37 = vpop.trf.xlu0 }
 0x23f   :  { %v193_v38 = vmul.f32 %v191_v36, %v171_v37 }
 0x241   :  { %v194_v39 = vsel %vm123_vm1, %v193_v38, 0.0 }
 0x242   :  { %v195_v40 = vrot.slane %v194_v39, 4 }
 0x244   :  { %v196_v41 = vadd.f32 %v195_v40, %v194_v39 }
 0x246   :  { %v197_v42 = vrot.slane %v196_v41, 2 }
 0x248   :  { %v198_v43 = vadd.f32 %v197_v42, %v196_v41 }
 0x24a   :  { %v199_v44 = vrot.slane %v198_v43, 1 }
 0x24c   :  { %v200_v46 = vadd.f32 %v199_v44, %v198_v43 }
 0x24e   :  { %v203_v47 = vadd.f32 %v202_v45, %v200_v46 }
 0x250   :  { %v247_v48 = vmul.f32 -1.442695, %v203_v47 }
 0x252   :  { %267 = vpow2.f32 %v247_v48 }
 0x258   :  { %v268_v49 = vpop.eup %267 }
 0x259   :  { %v207_v50 = vadd.f32 1.0, %v268_v49 }
 0x25b   :  { %269 = vrcp.f32 %v207_v50  ;;  %v219_v54 = vand.u32 2147483648, %v207_v50  ;;  %v217_v56 = vand.u32 2147483647, %v207_v50  ;;  %vm213_vm3 = vweird.f32 %v207_v50 }
 0x25d   :  { %v220_v58 = vor.u32 1.1754944e-38, %v219_v54  ;;  %vm218_vm6 = vcmp.eq.f32.partialorder %v217_v56, 8.507059e+37 }
 0x261   :  { %v270_v51 = vpop.eup %269 }
 0x262   :  { %v209_v52 = vmul.f32 %v270_v51, %v207_v50  ;;  %vm214_vm2 = vweird.f32 %v270_v51 }
 0x263   :  { %vm215_vm4 = vmor %vm213_vm3, %vm214_vm2 }
 0x264   :  { %v210_v53 = vsub.f32 1.0, %v209_v52 }
 0x266   :  { %v211_v55 = vmul.f32 %v270_v51, %v210_v53 }
 0x268   :  { %v212_v57 = vadd.f32 %v270_v51, %v211_v55 }
 0x26a   :  { %v216_v59 = vsel %vm215_vm4, %v270_v51, %v212_v57 }
 0x26b   :  { %v221_v60 = vsel %vm218_vm6, %v220_v58, %v216_v59 }
 0x26c   :  { %224 = vst.msk [vmem:[#allocation3] sm:$0x1] %vm223_vm5, %v221_v60 }
 0x26d   :  { %235 = dma.vmem_to_hbm [thread:$0]  %s231_s13, 16, %s233_s8, [#allocation4]  }
 0x26e   :  { %295 = dma.done.wait [#allocation4], 16  }
 0x26f   :  { %296 = vsyncadd [#allocation4], 4294967280 }
 0x270   :  { %240 = vsyncpa [#allocation4], 1 }

</bundles_post_ra>
